<compile_context>
chip_gen: v7x
topology: tpu7x:2x2x1
jax: 0.10.0
libtpu: 0.0.40
codegen_flags: <defaults>
</compile_context>

<pallas_src>
import functools

import jax
import jax.numpy as jnp
from jax.experimental import pallas as pl
from jax.experimental.pallas import tpu as pltpu


# ----------------------------------------------------------------------------
# Hardware-aware sizing helpers.
# ----------------------------------------------------------------------------

def _vmem_capacity_bytes():
    """Physical VMEM per TensorCore; conservative 64 MiB (v7x) default."""
    try:
        info = pltpu.get_tpu_info()
        for attr in ("vmem_capacity_bytes", "vmem_size_bytes", "vmem_bytes"):
            val = getattr(info, attr, None)
            if val:
                return int(val)
    except Exception:
        pass
    return 64 * 1024 * 1024


def _default_block_target(vmem_cap):
    """~8 MiB blocks on 128-MiB-VMEM parts (v5e/v6e), ~5 MiB on 64-MiB v7x."""
    return (8 << 20) if vmem_cap >= (100 << 20) else (5 << 20)


def _fused_threshold(vmem_cap, target):
    """Largest single-sample slab the fused path may take as one block."""
    return max(target, min(12 << 20, max(0, vmem_cap - (24 << 20)) // 4))


def _vmem_limit_bytes(block_bytes, vmem_cap):
    """Steady state ~ 4x block (in + out, double-buffered) plus headroom."""
    need = 4 * block_bytes + (16 << 20)
    hi = min(vmem_cap - (8 << 20), 100 << 20)
    return int(max(32 << 20, min(need, hi)))


def _pick_batch_tile(b, per_sample_bytes, target_bytes):
    """Samples per block, capped so the parallel axis keeps >= 2 grid steps."""
    bt = max(1, min(b, target_bytes // max(1, per_sample_bytes)))
    if b >= 2:
        bt = min(bt, b // 2)          # >= 2 parallel steps -> both v7x TCs
    bt = max(1, bt)
    while b % bt:
        bt -= 1
    return bt


def _pick_spatial_tile(hw, c, itemsize, target_bytes):
    """Return (tile, needs_mask): largest 128-aligned divisor of hw near the
    per-block byte target, else an uneven tail tile the pool kernel masks."""
    max_ts = max(128, (target_bytes // max(1, c * itemsize)) // 128 * 128)
    if hw <= max_ts:
        return hw, False              # full spatial extent in one block
    for ts in range(max_ts, 127, -128):
        if hw % ts == 0:
            return ts, False          # aligned divisor
    return max_ts, True               # uneven tail; lane-mask in the pool


# ----------------------------------------------------------------------------
# Kernels.
# ----------------------------------------------------------------------------

def _shift_channels(p, shift):
    """p: (bt, C) f32.  Returns q with q[:, c] = p[:, c + shift], zero-padded
    at the channel ends (matches Conv1d zero padding)."""
    bt, c = p.shape
    if shift == 0:
        return p
    k = abs(shift)
    if k >= c:
        return jnp.zeros_like(p)
    zeros = jnp.zeros((bt, k), p.dtype)
    if shift > 0:
        return jnp.concatenate([p[:, shift:], zeros], axis=1)
    return jnp.concatenate([zeros, p[:, : c - k]], axis=1)


def _fused_kernel(w_ref, x_ref, o_ref, *, taps, pad):
    """Single pass: spatial sum + k-tap channel conv + sigmoid + rescale on a
    resident (bt, C, H*W) block.  Taps in SMEM are pre-scaled by 1/(H*W)."""
    x = x_ref[...]                                            # (bt, C, HW)
    pooled = jnp.sum(x, axis=-1, dtype=jnp.float32)           # (bt, C) sums
    y = jnp.zeros_like(pooled)
    for j in range(taps):
        y = y + w_ref[j] * _shift_channels(pooled, j - pad)
    gate = jax.nn.sigmoid(y)[:, :, None]                      # (bt, C, 1) f32
    o_ref[...] = (x * gate).astype(o_ref.dtype)               # f32 mul, one cast


def _pool_kernel(x_ref, pooled_ref, *, hw, ts, masked):
    """Fallback pass 1: tiled global sum, f32 accumulation in the resident
    (bt, C, 1) output block across the spatial ("arbitrary") grid axis."""
    @pl.when(pl.program_id(1) == 0)
    def _():
        pooled_ref[...] = jnp.zeros_like(pooled_ref)

    x = x_ref[...]
    if masked:                                                # uneven tail tile
        lane = jax.lax.broadcasted_iota(jnp.int32, x.shape, 2)
        x = jnp.where(pl.program_id(1) * ts + lane < hw, x, jnp.zeros_like(x))
    pooled_ref[...] += jnp.sum(x, axis=-1, keepdims=True, dtype=jnp.float32)


def _scale_kernel(gate_ref, x_ref, o_ref):
    """Fallback pass 2: rescale by the precomputed per-channel gate."""
    o_ref[...] = (x_ref[...] * gate_ref[...]).astype(o_ref.dtype)


# ----------------------------------------------------------------------------
# Pallas-call wrappers.
# ----------------------------------------------------------------------------

def _eca_fused(x3, w_taps, target_bytes, vmem_cap):
    b, c, hw = x3.shape
    itemsize = jnp.dtype(x3.dtype).itemsize
    sample_bytes = c * hw * itemsize
    bt = _pick_batch_tile(b, sample_bytes, target_bytes)
    block_bytes = bt * sample_bytes
    taps = int(w_taps.shape[0])

    kernel = functools.partial(_fused_kernel, taps=taps, pad=(taps - 1) // 2)
    return pl.pallas_call(
        kernel,
        out_shape=jax.ShapeDtypeStruct((b, c, hw), x3.dtype),
        grid_spec=pltpu.PrefetchScalarGridSpec(
            num_scalar_prefetch=0,
            grid=(b // bt,),
            in_specs=[
                pl.BlockSpec(memory_space=pltpu.MemorySpace.SMEM),  # (k,) taps
                pl.BlockSpec((bt, c, hw), lambda i: (i, 0, 0)),     # x
            ],
            out_specs=pl.BlockSpec((bt, c, hw), lambda i: (i, 0, 0)),
        ),
        compiler_params=pltpu.CompilerParams(
            dimension_semantics=("parallel",),
            vmem_limit_bytes=_vmem_limit_bytes(block_bytes, vmem_cap),
        ),
    )(w_taps, x3)


def _eca_two_pass(x3, w_taps, target_bytes, vmem_cap):
    b, c, hw = x3.shape
    itemsize = jnp.dtype(x3.dtype).itemsize
    ts, needs_mask = _pick_spatial_tile(hw, c, itemsize, target_bytes)
    n_spatial = pl.cdiv(hw, ts)
    bt = _pick_batch_tile(b, c * ts * itemsize, target_bytes)
    grid = (b // bt, n_spatial)
    vmem_limit = _vmem_limit_bytes(bt * c * ts * itemsize, vmem_cap)

    # Pass 1: tiled global sum -> (B, C, 1) f32.
    pooled = pl.pallas_call(
        functools.partial(_pool_kernel, hw=hw, ts=ts, masked=needs_mask),
        out_shape=jax.ShapeDtypeStruct((b, c, 1), jnp.float32),
        grid_spec=pltpu.PrefetchScalarGridSpec(
            num_scalar_prefetch=0,
            grid=grid,
            in_specs=[pl.BlockSpec((bt, c, ts), lambda i, s: (i, 0, s))],
            out_specs=pl.BlockSpec((bt, c, 1), lambda i, s: (i, 0, 0)),
        ),
        compiler_params=pltpu.CompilerParams(
            dimension_semantics=("parallel", "arbitrary"),
            vmem_limit_bytes=vmem_limit,
        ),
    )(x3)

    # Tiny (B, C) gate in plain JAX (taps already folded with 1/(H*W)); keeps
    # pass 2 down to a single small side input.
    taps = int(w_taps.shape[0])
    pad = (taps - 1) // 2
    p = pooled[:, :, 0]
    pp = jnp.pad(p, ((0, 0), (pad, pad)))
    y = sum(w_taps[j] * pp[:, j:j + c] for j in range(taps))
    gate = jax.nn.sigmoid(y)[:, :, None]                      # (B, C, 1) f32

    # Pass 2: x * gate, lane-dense output, both grid axes parallel.
    return pl.pallas_call(
        _scale_kernel,
        out_shape=jax.ShapeDtypeStruct((b, c, hw), x3.dtype),
        grid_spec=pltpu.PrefetchScalarGridSpec(
            num_scalar_prefetch=0,
            grid=grid,
            in_specs=[
                pl.BlockSpec((bt, c, 1), lambda i, s: (i, 0, 0)),   # gate
                pl.BlockSpec((bt, c, ts), lambda i, s: (i, 0, s)),  # x
            ],
            out_specs=pl.BlockSpec((bt, c, ts), lambda i, s: (i, 0, s)),
        ),
        compiler_params=pltpu.CompilerParams(
            dimension_semantics=("parallel", "parallel"),
            vmem_limit_bytes=vmem_limit,
        ),
    )(gate, x3)


def eca_forward(x, conv_w, *, block_target_bytes=None):
    """ECA forward.  x: (B, C, H, W); conv_w: Conv1d(1, 1, k, bias=False)
    weights (any shape reshapeable to (k,), e.g. torch's (1, 1, k))."""
    b, c, h, w = x.shape
    hw = h * w
    x3 = x.reshape(b, c, hw)                                  # lane-dense layout
    itemsize = jnp.dtype(x.dtype).itemsize

    w_taps = jnp.asarray(conv_w, jnp.float32).reshape(-1) / float(hw)

    vmem_cap = _vmem_capacity_bytes()
    if block_target_bytes is not None:
        target = fused_max = int(block_target_bytes)
    else:
        target = _default_block_target(vmem_cap)
        fused_max = _fused_threshold(vmem_cap, target)

    if c * hw * itemsize <= fused_max:
        out3 = _eca_fused(x3, w_taps, target, vmem_cap)
    else:
        out3 = _eca_two_pass(x3, w_taps, target, vmem_cap)
    return out3.reshape(b, c, h, w)


def eca_reference(x, conv_w):
    """Plain-JAX reference matching the PyTorch ECA forward."""
    conv_w = jnp.asarray(conv_w, jnp.float32).reshape(-1)
    k = int(conv_w.shape[0])
    pad = (k - 1) // 2
    p = jnp.mean(x.astype(jnp.float32), axis=(2, 3))
    pp = jnp.pad(p, ((0, 0), (pad, pad)))
    y = sum(conv_w[j] * pp[:, j:j + x.shape[1]] for j in range(k))
    gate = jax.nn.sigmoid(y)
    return (x * gate[:, :, None, None]).astype(x.dtype)


if __name__ == "__main__":
    key = jax.random.PRNGKey(0)
    kx, kw = jax.random.split(key)

    B, C, H, W = 2, 4, 16, 16
    x = jax.random.normal(kx, (B, C, H, W), dtype=jnp.float32)
    # Conv1d(1, 1, kernel_size=3, bias=False) weight has shape (1, 1, 3) in torch.
    conv_w = jax.random.uniform(kw, (1, 1, 3), dtype=jnp.float32,
                                minval=-0.5, maxval=0.5)

    # Fused single-pass path (whole sample fits one block).
    out = jax.block_until_ready(eca_forward(x, conv_w))
    assert jnp.allclose(out, eca_reference(x, conv_w), atol=1e-5, rtol=1e-5)

    # Non-128-divisible spatial size (7x7) also takes the fused path.
    x_odd = jax.random.normal(kx, (1, 8, 7, 7), dtype=jnp.float32)
    out_odd = jax.block_until_ready(eca_forward(x_odd, conv_w))
    assert jnp.allclose(out_odd, eca_reference(x_odd, conv_w), atol=1e-5, rtol=1e-5)

    # Force the two-pass fallback (tiny block budget), 128-aligned spatial tiles.
    out_fb = jax.block_until_ready(eca_forward(x, conv_w, block_target_bytes=2048))
    assert jnp.allclose(out_fb, eca_reference(x, conv_w), atol=1e-5, rtol=1e-5)

    # Force the fallback with an uneven (lane-masked) tail spatial tile.
    x_tail = jax.random.normal(kx, (1, 8, 20, 20), dtype=jnp.float32)
    out_tail = jax.block_until_ready(
        eca_forward(x_tail, conv_w, block_target_bytes=4096))
    assert jnp.allclose(out_tail, eca_reference(x_tail, conv_w), atol=1e-5, rtol=1e-5)

    print("KERNEL_OK")
</pallas_src>

<mosaic_0001>
module attributes {stable_mosaic.version = 11 : i64} {
  func.func @_fused_kernel(%arg0: i32, %arg1: memref<3xf32, #tpu.memory_space<smem>>, %arg2: memref<1x4x256xf32, #tpu.memory_space<vmem>>, %arg3: memref<1x4x256xf32, #tpu.memory_space<vmem>>) attributes {dimension_semantics = [#tpu.dimension_semantics<parallel>], iteration_bounds = array<i64: 2>, scalar_prefetch = 0 : i64, scratch_operands = 0 : i64, tpu.core_type = #tpu.core_type<tc>, window_params = [{transform_indices = @transform_0, window_bounds = array<i64: 3>}, {transform_indices = @transform_1, window_bounds = array<i64: 1, 4, 256>}, {transform_indices = @transform_2, window_bounds = array<i64: 1, 4, 256>}]} {
    %c0 = arith.constant 0 : index
    %c0_0 = arith.constant 0 : index
    %c0_1 = arith.constant 0 : index
    %0 = vector.load %arg2[%c0, %c0_0, %c0_1] : memref<1x4x256xf32, #tpu.memory_space<vmem>>, vector<1x4x256xf32>
    %cst = arith.constant dense<0.000000e+00> : vector<1x4xf32>
    %1 = vector.multi_reduction <add>, %0, %cst [2] : vector<1x4x256xf32> to vector<1x4xf32>
    %cst_2 = arith.constant 0.000000e+00 : f32
    %2 = vector.broadcast %cst_2 : f32 to vector<1x4xf32>
    %c0_3 = arith.constant 0 : index
    %3 = memref.load %arg1[%c0_3] : memref<3xf32, #tpu.memory_space<smem>>
    %cst_4 = arith.constant 0.000000e+00 : f32
    %4 = vector.broadcast %cst_4 : f32 to vector<1x1xf32>
    %5 = vector.extract_strided_slice %1 {offsets = [0, 0], sizes = [1, 3], strides = [1, 1]} : vector<1x4xf32> to vector<1x3xf32>
    %6 = tpu.concatenate %4, %5 in 1 : vector<1x1xf32>, vector<1x3xf32> -> vector<1x4xf32>
    %7 = vector.broadcast %3 : f32 to vector<1x4xf32>
    %8 = arith.mulf %7, %6 : vector<1x4xf32>
    %9 = arith.addf %2, %8 : vector<1x4xf32>
    %c1 = arith.constant 1 : index
    %10 = memref.load %arg1[%c1] : memref<3xf32, #tpu.memory_space<smem>>
    %11 = vector.broadcast %10 : f32 to vector<1x4xf32>
    %12 = arith.mulf %11, %1 : vector<1x4xf32>
    %13 = arith.addf %9, %12 : vector<1x4xf32>
    %c2 = arith.constant 2 : index
    %14 = memref.load %arg1[%c2] : memref<3xf32, #tpu.memory_space<smem>>
    %cst_5 = arith.constant 0.000000e+00 : f32
    %15 = vector.broadcast %cst_5 : f32 to vector<1x1xf32>
    %16 = vector.extract_strided_slice %1 {offsets = [0, 1], sizes = [1, 3], strides = [1, 1]} : vector<1x4xf32> to vector<1x3xf32>
    %17 = tpu.concatenate %16, %15 in 1 : vector<1x3xf32>, vector<1x1xf32> -> vector<1x4xf32>
    %18 = vector.broadcast %14 : f32 to vector<1x4xf32>
    %19 = arith.mulf %18, %17 : vector<1x4xf32>
    %20 = arith.addf %13, %19 : vector<1x4xf32>
    %21 = arith.negf %20 : vector<1x4xf32>
    %22 = math.exp %21 : vector<1x4xf32>
    %cst_6 = arith.constant 1.000000e+00 : f32
    %23 = vector.broadcast %cst_6 : f32 to vector<1x4xf32>
    %24 = arith.addf %23, %22 : vector<1x4xf32>
    %25 = arith.divf %23, %24 : vector<1x4xf32>
    %26 = vector.shape_cast %25 : vector<1x4xf32> to vector<1x4x1xf32>
    %27 = vector.broadcast %26 : vector<1x4x1xf32> to vector<1x4x256xf32>
    %28 = arith.mulf %0, %27 : vector<1x4x256xf32>
    %c0_7 = arith.constant 0 : index
    %c0_8 = arith.constant 0 : index
    %c0_9 = arith.constant 0 : index
    %29 = vector.load %arg3[%c0_7, %c0_8, %c0_9] : memref<1x4x256xf32, #tpu.memory_space<vmem>>, vector<1x4x256xf32>
    tpu.vector_store %arg3[%c0_7, %c0_8, %c0_9], %28 {strides = array<i32>} : memref<1x4x256xf32, #tpu.memory_space<vmem>>, vector<1x4x256xf32>,
    return
  }
  func.func @transform_0(%arg0: i32) -> i32 {
    %c0_i32 = arith.constant 0 : i32
    %c0_i32_0 = arith.constant 0 : i32
    return %c0_i32 : i32
  }
  func.func @transform_1(%arg0: i32) -> (i32, i32, i32) {
    %c0_i32 = arith.constant 0 : i32
    %c0_i32_0 = arith.constant 0 : i32
    %c0_i32_1 = arith.constant 0 : i32
    return %arg0, %c0_i32, %c0_i32_0 : i32, i32, i32
  }
  func.func @transform_2(%arg0: i32) -> (i32, i32, i32) {
    %c0_i32 = arith.constant 0 : i32
    %c0_i32_0 = arith.constant 0 : i32
    %c0_i32_1 = arith.constant 0 : i32
    return %arg0, %c0_i32, %c0_i32_0 : i32, i32, i32
  }
}

</mosaic_0001>

<bundles_post_ra>
// kernel: tpu_custom_call.1
= control target key start
LH: loop header
LB: loop body
LE: loop exit
PB: predicated region body
PF: predicated region fallthrough
CT: control target
= control target key end

     0   :  { %7 = vsyncpa [#allocation5], 0  ;;  %s770_s0 = inlined_call_operand.hbm [shape: f32[3], index: 0, kind: input, shape index: {}]   ;;  %s771_s1 = inlined_call_operand.hbm [shape: f32[2,4,256], index: 1, kind: input, shape index: {}]   ;;  %s772_s2 = inlined_call_operand.hbm [shape: f32[2,4,256], index: 2, kind: output, shape index: {}]  }
   0x1   :  { %8 = vsyncpa [#allocation3], 0 }
   0x2   :  { %10 = vsyncpa [#allocation3 + $0x1], 0 }
   0x3   :  { %11 = vsyncpa [#allocation4], 0 }
   0x4   :  { %13 = vsyncpa [#allocation4 + $0x1], 0  ;;  %s561_s9 = smov 0   ;;  %s563_s10 = smov 0  }
   0x5   :  { %s565_s11 = smov 0   ;;  %s567_s12 = smov 0  }
   0x6 LB: > { %s582_s13 = sadd.s32 4294967295, %s540_s12   ;;  %s343_s14 = sadd.s32 4294967294, %s540_s12   ;;  %s540_s12 = sphi %s567_s12, %s793_s12   ;;  %s536_s11 = sphi %s565_s11, %s792_s11   ;;  %s532_s10 = sphi %s563_s10, %s791_s10   ;;  %s528_s9 = sphi %s561_s9, %s790_s9  }
   0x7   : > { %p60_p0 = scmp.ne.s32.totalorder %s532_s10, %s528_s9  ;;  %p773_p1 = scmp.eq.s32.totalorder %s582_s13, 0 }
   0x8   : > { %p90_p3 = scmp.eq.s32.totalorder %s343_s14, 1  ;;  %p344_p5 = scmp.ge.s32.totalorder %s540_s12, 1 }
   0x9   : > { %p591_p4 = por %p773_p1, %p60_p0  ;;  %p97_p7 = scmp.lt.s32.totalorder %s540_s12, 3 }
   0xa   : > { %p596_p6 = por %p90_p3, %p60_p0  ;;  %s607_s18 = sadd.s32 1, %s540_s12  }
   0xb   : > { %s776_s15 = scalar_select %p591_p4, 1, 0 }
   0xc   : > { %s777_s16 = scalar_select %p596_p6, 1, 0 }
   0xd   : > { %p601_p8 = pnand %p344_p5, %p97_p7  ;;  %s44_s19 = ssub.s32 %s540_s12, %s607_s18 }
   0xe   : > { %s47_s20 = sadd.s32 1, %s536_s11  ;;  %p620_p12 = scmp.eq.s32.totalorder %s44_s19, 0 }
   0xf   : > { %p372_p10 = pneg %p601_p8  ;;  %p54_p13 = scmp.ne.s32.totalorder %s536_s11, %s532_s10 }
  0x10   : > { %p55_p0 = scmp.eq.s32.totalorder %s540_s12, 0  ;;  %p385_p3 = scmp.lt.s32.totalorder %s540_s12, 2 }
  0x11   : > { %p616_p11 = pnand %p372_p10, %p773_p1  ;;  %s427_s25 = scalar_lea.hbm %s770_s0, 16 }
  0x12   : > { %p428_p5 = scmp.ne.s32.totalorder %s770_s0, %s427_s25  ;;  %p434_p1 = scmp.lt.u32.totalorder %s427_s25, %s770_s0 }
  0x13   : > { %p429_p7 = pneg %p616_p11 }
  0x15   : > { %p430_p10 = pnand %p429_p7, %p428_p5 }
  0x17   : > { %p431_p9 = pneg %p430_p10 }
  0x19   : > { %p436_p2 = pnand %p434_p1, %p431_p9 }
  0x1b   : > { %439 = shalt.err (!%p436_p2)
}
  0x1c   : > { %s542_s30 = smov [#allocation2]   ;;  %p56_p1 = por %p55_p0, %p54_p13 }
  0x1d   : > { %375 = dma.hbm_to_smem (!%p616_p11), %s770_s0, 16, %s542_s30, [#allocation5]  }
  0x1e   : > { %s647_s5 = scalar_select %p620_p12, %s536_s11, %s47_s20  }
  0x1f   : > { %p781_p2 = scmp.eq.s32.totalorder %s582_s13, 1  ;;  %s119_s7 = sand.u32 1, %s536_s11  }
  0x20   : > { %s362_s8 = sshll.u32 %s540_s12, 7  ;;  %s347_s14 = sshll.u32 %s119_s7, 3 }
  0x21   : > { %p659_p9 = por %p781_p2, %p54_p13  ;;  %s668_s23 = scalar_lea.hbm %s771_s1, %s362_s8 }
  0x22   : > { %s123_s20 = scalar_lea.vmem [#allocation6], %s347_s14  ;;  %p672_p11 = pnand %p385_p3, %p56_p1 }
  0x23   : > { %s782_s6 = scalar_select %p659_p9, 1, 0 }
  0x24   : > { %s131_s22 = sshll.u32 %s123_s20, 4  ;;  %s120_s25 = scalar_lea.sflag [#allocation3], %s119_s7  ;;  %s676_s22 = int_to_ptr.vmem [resolvable:$true] %s131_s22 }
  0x25   : > { %s440_s26 = scalar_lea.hbm %s668_s23, 128  ;;  %p442_p13 = pneg %p672_p11 }
  0x26   : > { %p441_p12 = scmp.ne.s32.totalorder %s668_s23, %s440_s26  ;;  %s445_s29 = scalar_lea.hbm %s771_s1, 256 }
  0x27   : > { %p446_p3 = scmp.lt.u32.totalorder %s668_s23, %s771_s1  ;;  %p447_p7 = scmp.lt.u32.totalorder %s445_s29, %s440_s26 }
  0x28   : > { %p443_p0 = pnand %p442_p13, %p441_p12  ;;  %p449_p1 = scmp.lt.u32.totalorder %s440_s26, %s668_s23 }
  0x29   : > { %p448_p10 = por %p447_p7, %p446_p3 }
  0x2a   : > { %p444_p5 = pneg %p443_p0 }
  0x2b   : > { %p450_p2 = por %p449_p1, %p448_p10 }
  0x2d   : > { %p451_p6 = pnand %p450_p2, %p444_p5 }
  0x2f   : > { %454 = shalt.err (!%p451_p6)
}
  0x30   : > { %s455_s4 = scalar_lea.vmem %s676_s22, 128  ;;  %s543_s7 = smov [#allocation6]  }
  0x31   : > { %p456_p12 = scmp.ne.s32.totalorder %s676_s22, %s455_s4  ;;  %s460_s8 = sshll.u32 %s543_s7, 4  ;;  %s461_s8 = int_to_ptr.vmem [resolvable:$false] %s460_s8 }
  0x32   : > { %s462_s14 = scalar_lea.vmem %s461_s8, 256  ;;  %p463_p4 = scmp.lt.s32.totalorder %s676_s22, %s461_s8 }
  0x33   : > { %p458_p0 = pnand %p456_p12, %p442_p13  ;;  %p464_p3 = scmp.lt.s32.totalorder %s462_s14, %s455_s4 }
  0x35   : > { %p459_p9 = pneg %p458_p0  ;;  %p465_p7 = por %p464_p3, %p463_p4 }
  0x37   : > { %p466_p10 = pnand %p465_p7, %p459_p9 }
  0x39   : > { %469 = shalt.err (!%p466_p10)
}
  0x3a   : > { %379 = dma.hbm_to_vmem [thread:$0]  (!%p672_p11), %s668_s23, 128, %s676_s22, %s120_s25  }
  0x3b   : > { %140 = sbr.rel (%p601_p8) target bundleno = 391 (0x187), region = 28  ;;  %p784_p6 = scmp.eq.s32.totalorder (!%p601_p8), %s582_s13, 0 }
  0x42   : > { %515 = dma.done.wait (%p784_p6), [#allocation5], 16   ;;  %p785_p13 = pmov %p784_p6 }
  0x43   : > { %s710_s19 = sand.u32 1, %s532_s10   ;;  %p786_p4 = scmp.ne.s32.totalorder %s776_s15, 0 }
  0x44   : > { %517 = vsyncadd (%p785_p13), [#allocation5], 4294967280  ;;  %s352_s21 = sshll.u32 %s710_s19, 3  ;;  %s147_s20 = scalar_lea.sflag [#allocation3], %s710_s19 }
  0x45   : > { %s150_s23 = scalar_lea.vmem [#allocation6], %s352_s21 }
  0x46   : > { %519 = dma.done.wait (%p786_p4), %s147_s20, 128  }
  0x47   : > { %521 = vsyncadd (%p786_p4), %s147_s20, 4294967168 }
  0x48   : > { %155 = sfence }
  0x49   : > { %v172_v0 = vld [vmem:[%s150_s23] sm:$0xff]  ;;  %vm176_vm0 = vcmask 1043456   ;;  %v184_v5 = vlaneseq  ;;  %s354_s17 = sld [smem:[#allocation2 + $0x1]]  ;;  %s182_s22 = sld [smem:[#allocation2]]  ;;  %vm192_vm1 = vcmask 7168   ;;  %vm214_vm2 = vcmask 23552  }
  0x4a   : > { %v174_v1 = vcombine.high %v172_v0, %v172_v0  ;;  %v177_v2 = vsel %vm176_vm0, %v172_v0, 0.0  ;;  %s355_s24 = sld [smem:[#allocation2 + $0x2]]  ;;  %v544_v34 = vmov 839922192   ;;  %s363_s15 = sshll.u32 %s582_s13, 7 }
  0x4b   : > { %v185_v6 = vand.u32 127, %v184_v5  ;;  %v188_v8 = vshrl.u32 %v184_v5, 7  ;;  %v237_v35 = vunpack.c.l.s4 %v544_v34  ;;  %s171_s25 = scalar_lea.vmem [#allocation7], %s352_s21  ;;  %s726_s29 = scalar_lea.hbm %s772_s2, %s363_s15 }
  0x4c   : > { %v178_v3 = vsel %vm176_vm0, %v174_v1, 0.0  ;;  %s261_s26 = sshll.u32 %s171_s25, 4  ;;  %s247_s30 = scalar_lea.sflag [#allocation4], %s710_s19  ;;  %s728_s26 = int_to_ptr.vmem [resolvable:$true] %s261_s26 }
  0x4d   : > { %v179_v4 = vadd.f32 %v178_v3, %v177_v2  ;;  %v186_v7 = vadd.s32 4294967295, %v185_v6  ;;  %v208_v9 = vadd.s32 1, %v185_v6  ;;  %v203_v13 = vsub.s32 %v185_v6, %v188_v8  ;;  %s470_s3 = scalar_lea.vmem %s728_s26, 128  ;;  %p787_p9 = scmp.ne.s32.totalorder %s782_s6, 0 }
  0x4e   : > { %v230_v31 = vsub.s32 0, %v188_v8  ;;  %v238_v36 = vunpack.c.0.s8 %v237_v35  ;;  %p471_p8 = scmp.ne.s32.totalorder %s728_s26, %s470_s3  ;;  %s545_s13 = smov [#allocation7]  }
  0x4f   : > { %180 = vadd.xlane.f32.xlu0 %v179_v4  ;;  %v189_v10 = vsub.s32 %v186_v7, %v188_v8  ;;  %v211_v11 = vsub.s32 %v208_v9, %v188_v8  ;;  %v198_v12 = vstv %s354_s17  ;;  %v194_v14 = vstv %s182_s22  ;;  %s474_s4 = sshll.u32 %s545_s13, 4  ;;  %s475_s4 = int_to_ptr.vmem [resolvable:$false] %s474_s4 }
  0x50   : > { %v216_v16 = vstv %s355_s24  ;;  %v241_v37 = vsub.s32 %v238_v36, %v188_v8  ;;  %p472_p11 = pnand %p471_p8, %p787_p9  ;;  %s476_s7 = scalar_lea.vmem %s475_s4, 256 }
  0x51   : > { %p477_p1 = scmp.lt.s32.totalorder %s728_s26, %s475_s4  ;;  %p478_p2 = scmp.lt.s32.totalorder %s476_s7, %s470_s3 }
  0x52   : > { %p473_p5 = pneg %p472_p11 }
  0x53   : > { %p479_p12 = por %p478_p2, %p477_p1 }
  0x55   : > { %p480_p0 = pnand %p479_p12, %p473_p5 }
  0xdc   : > { %v181_v15 = vpop.xlane.xlu0 %180 }
  0xdd   : > { %v190_v17 = vrot.slane %v181_v15, %v189_v10  ;;  %v199_v18 = vmul.f32 %v198_v12, %v181_v15  ;;  %v212_v19 = vrot.slane %v181_v15, %v211_v11 }
  0xdf   : > { %v193_v20 = vsel %vm192_vm1, 0.0, %v190_v17  ;;  %v204_v21 = vrot.slane %v199_v18, %v203_v13  ;;  %v215_v22 = vsel %vm214_vm2, %v212_v19, 0.0 }
  0xe0   : > { %v195_v23 = vmul.f32 %v194_v14, %v193_v20  ;;  %v217_v24 = vmul.f32 %v216_v16, %v215_v22 }
  0xe2   : > { %v206_v25 = vadd.f32 %v204_v21, %v195_v23  ;;  %v219_v26 = vrot.slane %v217_v24, 1 }
  0xe4   : > { %v221_v27 = vadd.f32 %v219_v26, %v206_v25 }
  0xe6   : > { %v356_v28 = vmul.f32 -1.442695, %v221_v27 }
  0xe8   : > { %423 = vpow2.f32 %v356_v28 }
  0xf2   : > { %v424_v29 = vpop.eup %423 }
  0xf3   : > { %v225_v30 = vadd.f32 1.0, %v424_v29 }
  0xf5   : > { %425 = vrcp.f32 %v225_v30 }
  0xff   : > { %v426_v32 = vpop.eup %425 }
 0x100   : > { %v231_v33 = vrot.slane %v426_v32, %v230_v31 }
 0x102   : > { %233 = vbcast.lane.b32.xlu0 %v231_v33, 256 }
 0x174   : > { %v234_v38 = vpop.permute.xlu0 %233 }
 0x175   : > { %v242_v39 = vrot.slane %v234_v38, %v241_v37 }
 0x177   : > { %v244_v40 = vmul.f32 %v242_v39, %v172_v0 }
 0x179   : > { %245 = vst [vmem:[%s171_s25] sm:$0xff] %v244_v40 }
 0x17a   : > { %483 = shalt.err (!%p480_p0)
}
 0x17b   : > { %s484_s8 = scalar_lea.hbm %s726_s29, 128  ;;  %s488_s21 = scalar_lea.hbm %s772_s2, 256 }
 0x17c   : > { %p485_p3 = scmp.ne.s32.totalorder %s726_s29, %s484_s8  ;;  %p489_p6 = scmp.lt.u32.totalorder %s726_s29, %s772_s2 }
 0x17d   : > { %p490_p13 = scmp.lt.u32.totalorder %s488_s21, %s484_s8  ;;  %p492_p8 = scmp.lt.u32.totalorder %s484_s8, %s726_s29 }
 0x17e   : > { %p486_p7 = pnand %p485_p3, %p787_p9 }
 0x17f   : > { %p491_p4 = por %p490_p13, %p489_p6 }
 0x180   : > { %p487_p10 = pneg %p486_p7 }
 0x181   : > { %p493_p11 = por %p492_p8, %p491_p4 }
 0x183   : > { %p494_p5 = pnand %p493_p11, %p487_p10 }
 0x185   : > { %497 = shalt.err (!%p494_p5)
}
 0x186   : > { %370 = dma.vmem_to_hbm [thread:$0]  (%p787_p9), %s728_s26, 128, %s726_s29, %s247_s30  }
 0x187 PF: > { %s273_s17 = sand.u32 1, %s528_s9   ;;  %p788_p1 = scmp.ne.s32.totalorder %s777_s16, 0 }
 0x188   : > { %p789_p2 = scmp.ge.s32.totalorder %s540_s12, 2  ;;  %s274_s22 = scalar_lea.sflag [#allocation4], %s273_s17 }
 0x18a   : > { %p381_p12 = pnand %p789_p2, %p788_p1 }
 0x18c   : > { %523 = dma.done.wait (!%p381_p12), %s274_s22, 128  }
 0x18d   : > { %525 = vsyncadd (!%p381_p12), %s274_s22, 4294967168  ;;  %p16_p0 = scmp.ge.s32.totalorder %s607_s18, 4   ;;  %s790_s9 = smov %s532_s10 }
 0x18e   : > { %s791_s10 = smov %s536_s11  ;;  %s792_s11 = smov %s647_s5 }
 0x18f   : > { %s793_s12 = smov %s607_s18  ;;  %18 = sbr.rel (!%p16_p0) target bundleno = 6 (0x6), region = 78 }
 0x196   :  { %279 = vsyncpa [#allocation3], 1 }
 0x197   :  { %281 = vsyncpa [#allocation3 + $0x1], 1 }
 0x198   :  { %282 = vsyncpa [#allocation4], 1 }
 0x199   :  { %284 = vsyncpa [#allocation4 + $0x1], 1 }
 0x19a   :  { %285 = vsyncpa [#allocation5], 1 }
 0x19b   :  { %287 = vsyncpa [#allocation5 + $0x1], 1 }

</bundles_post_ra>
